<compile_context>
chip_gen: v7x
topology: tpu7x:2x2x1
jax: 0.10.0
libtpu: 0.0.40
codegen_flags: <defaults>
</compile_context>

<pallas_src>
import math

import numpy as np
import jax
import jax.numpy as jnp
from jax import lax
from jax.experimental import pallas as pl
from jax.experimental.pallas import tpu as pltpu

LN_EPS = 1e-12
_SQRT2 = math.sqrt(2.0)


def _round_up(x, m):
    return (x + m - 1) // m * m


def _gelu_exact(x):
    # HF "gelu" = exact erf-based gelu
    return 0.5 * x * (1.0 + lax.erf(x / _SQRT2))


def _head_kernel(x_ref, wt_ref, bt_ref, g_ref, beta_ref, wf_ref, bias_ref,
                 o_ref, h_ref):
    # j == 0: compute transform + gelu + LayerNorm once per row tile into the
    # persistent VMEM scratch (reused for every vocab tile of this row tile).
    @pl.when(pl.program_id(1) == 0)
    def _():
        t = jnp.dot(x_ref[...], wt_ref[...],
                    preferred_element_type=jnp.float32)      # bf16 x bf16 -> f32
        t = t + bt_ref[...]
        t = _gelu_exact(t)
        mean = jnp.mean(t, axis=-1, keepdims=True)
        var = jnp.mean(jnp.square(t - mean), axis=-1, keepdims=True)
        t = (t - mean) * lax.rsqrt(var + LN_EPS)
        t = t * g_ref[...] + beta_ref[...]
        h_ref[...] = t.astype(h_ref.dtype)                   # store bf16 for MXU

    # Fused (decoder1 @ decoder2 @ decoder) chain for this vocab tile:
    # [TM, H] bf16 @ [H, TV] bf16 -> f32, plus vocab bias.
    logits = jnp.dot(h_ref[...], wf_ref[...], preferred_element_type=jnp.float32)
    o_ref[...] = (logits + bias_ref[...]).astype(o_ref.dtype)


def prepare_params(params, *, block_v=512):
    """One-time repack of PyTorch-layout parameters into the kernel layout.

    Call once at parameter-load time (NOT per forward call):
      - transposes weights to [in, out],
      - fuses the bias-free decoder1/decoder2/decoder chain into one [H, V]
        matrix (mathematically exact: pure linear composition),
      - casts MXU operands to bf16,
      - pads the vocab dim lane-dense to a multiple of the vocab tile, and
      - pre-tiles the fused decoder weight to [V/TV, H, TV] so each grid step
        is one contiguous DMA (instead of H strided TV*2-byte segments).
    """
    H = params["transform_w"].shape[0]
    V = params["decoder_w"].shape[0]

    block_v = min(block_v, _round_up(V, 128))
    assert block_v % 128 == 0
    vp = _round_up(V, block_v)
    nvt = vp // block_v

    # x @ W1^T @ W2^T @ Wd^T  ==  x @ (W1^T @ W2^T @ Wd^T)   -> fuse once.
    wf = (params["decoder1_w"].T.astype(jnp.float32)
          @ params["decoder2_w"].T.astype(jnp.float32)
          @ params["decoder_w"].T.astype(jnp.float32))            # [H, V] f32
    bias = params["vocab_bias"].astype(jnp.float32).reshape(1, V)
    if vp != V:
        wf = jnp.pad(wf, ((0, 0), (0, vp - V)))
        bias = jnp.pad(bias, ((0, 0), (0, vp - V)))

    # Contiguous per-vocab-tile layout for the dominant HBM stream.
    wf_tiled = (wf.reshape(H, nvt, block_v)
                  .transpose(1, 0, 2)
                  .astype(jnp.bfloat16))                          # [nvt, H, TV]

    return {
        "wt": params["transform_w"].T.astype(jnp.bfloat16),       # [H, H]
        "bt": params["transform_b"].astype(jnp.float32).reshape(1, H),
        "gamma": params["ln_gamma"].astype(jnp.float32).reshape(1, H),
        "beta": params["ln_beta"].astype(jnp.float32).reshape(1, H),
        "wf": wf_tiled,                                           # [Vp/TV, H, TV] bf16
        "bias": bias,                                             # [1, Vp] f32
        "vocab_size": V,
        "block_v": block_v,
    }


def _vmem_limit_bytes(TM, H, TV, out_itemsize, decoder_buffers):
    """Scoped-VMEM budget derived from the actual tile footprint."""
    need = (
        2 * TM * H * 2                       # x row tile, double-buffered bf16
        + H * H * 2                          # transform W (single buffer) bf16
        + 3 * 8 * H * 4                      # bt/gamma/beta ((8,*)-padded f32)
        + decoder_buffers * H * TV * 2       # fused decoder W tiles, bf16
        + 2 * 8 * TV * 4                     # vocab bias tiles ((8,*)-padded f32)
        + 2 * TM * TV * out_itemsize         # logits out tile, double-buffered
        + TM * H * 2                         # persistent h scratch, bf16
    )
    # Headroom for compiler temporaries; clamp below v7x's 64 MiB per TC.
    return int(min(max(need + (8 << 20), 32 << 20), 60 << 20))


def bert_lm_prediction_multi_head(hidden_states, prepared, *, block_m=1024,
                                  out_dtype=jnp.float32, decoder_buffers=2,
                                  return_padded=False):
    """hidden_states: [B, S, H] -> logits [B, S, V] (out_dtype).

    block_m:        row tile; keep a multiple of 256 for the v6e/v7x MXU.
                    On v7x pick it so Mp/block_m >= 2 (megacore scaling).
    decoder_buffers: pipeline depth for the fused decoder weight stream; raise
                    to 3 if profiling shows exposed DMA at row-tile boundaries.
    return_padded:  return the raw [Mp, Vp] kernel output (skips the slice
                    copy); caller must mask / ignore the padding.
    """
    B, S, H = hidden_states.shape
    M = B * S
    V = prepared["vocab_size"]
    TV = prepared["block_v"]
    nvt, Hw, TVw = prepared["wf"].shape
    assert Hw == H and TVw == TV
    Vp = nvt * TV

    x2d = hidden_states.reshape(M, H).astype(jnp.bfloat16)

    # Row tile: as large as the VMEM budget allows (the fused decoder weight
    # is re-streamed from HBM once per row tile -> big TM = higher AI).
    TM = min(block_m, _round_up(M, 16))     # multiple of 16 (bf16 sublane pack)
    Mp = _round_up(M, TM)
    if Mp != M:
        # Padded (zero) rows produce finite LayerNorm output; sliced/masked off.
        x2d = jnp.pad(x2d, ((0, Mp - M), (0, 0)))

    grid = (Mp // TM, Vp // TV)
    out_itemsize = np.dtype(out_dtype).itemsize

    cost = pl.CostEstimate(
        flops=int(2 * Mp * H * H + 2 * Mp * H * Vp),
        transcendentals=int(Mp * H),
        bytes_accessed=int(
            2 * Mp * H                            # x (bf16), streamed once
            + 2 * H * H + 3 * 4 * H               # transform W + b + LN params
            + grid[0] * (2 * H * Vp + 4 * Vp)     # fused decoder W + vocab bias,
                                                  # re-streamed once per ROW tile
            + out_itemsize * Mp * Vp),            # logits out
    )

    resident = pl.Buffered(1)   # constant-index operands: no double buffer

    out = pl.pallas_call(
        _head_kernel,
        out_shape=jax.ShapeDtypeStruct((Mp, Vp), out_dtype),
        grid_spec=pltpu.PrefetchScalarGridSpec(
            num_scalar_prefetch=0,
            grid=grid,
            in_specs=[
                pl.BlockSpec((TM, H), lambda i, j: (i, 0)),           # x row tile
                pl.BlockSpec((H, H), lambda i, j: (0, 0),
                             pipeline_mode=resident),                 # transform W
                pl.BlockSpec((1, H), lambda i, j: (0, 0),
                             pipeline_mode=resident),                 # transform b
                pl.BlockSpec((1, H), lambda i, j: (0, 0),
                             pipeline_mode=resident),                 # LN gamma
                pl.BlockSpec((1, H), lambda i, j: (0, 0),
                             pipeline_mode=resident),                 # LN beta
                pl.BlockSpec((pl.Squeezed(), H, TV),
                             lambda i, j: (j, 0, 0),
                             pipeline_mode=pl.Buffered(decoder_buffers)),
                                                                      # fused decoder W
                                                                      # (pre-tiled, contiguous)
                pl.BlockSpec((1, TV), lambda i, j: (0, j)),           # vocab bias
            ],
            out_specs=pl.BlockSpec((TM, TV), lambda i, j: (i, j)),
            scratch_shapes=[pltpu.VMEM((TM, H), jnp.bfloat16)],       # persistent h
        ),
        compiler_params=pltpu.CompilerParams(
            dimension_semantics=("parallel", "arbitrary"),
            vmem_limit_bytes=_vmem_limit_bytes(TM, H, TV, out_itemsize,
                                               decoder_buffers),
        ),
        cost_estimate=cost,
    )(x2d, prepared["wt"], prepared["bt"], prepared["gamma"],
      prepared["beta"], prepared["wf"], prepared["bias"])

    if return_padded:
        return out                      # [Mp, Vp]; caller handles the padding
    return out[:M, :V].reshape(B, S, V)


def init_params(key, hidden_size, vocab_size):
    """PyTorch-layout parameters ([out, in] weights), randomized so every
    term (biases, LN affine) is exercised by the correctness check."""
    ks = jax.random.split(key, 8)
    std = 1.0 / math.sqrt(hidden_size)
    return {
        "transform_w": std * jax.random.normal(ks[0], (hidden_size, hidden_size), jnp.float32),
        "transform_b": 0.1 * jax.random.normal(ks[1], (hidden_size,), jnp.float32),
        "ln_gamma": 1.0 + 0.1 * jax.random.normal(ks[2], (hidden_size,), jnp.float32),
        "ln_beta": 0.1 * jax.random.normal(ks[3], (hidden_size,), jnp.float32),
        "decoder1_w": std * jax.random.normal(ks[4], (hidden_size, hidden_size), jnp.float32),
        "decoder2_w": std * jax.random.normal(ks[5], (hidden_size, hidden_size), jnp.float32),
        "decoder_w": std * jax.random.normal(ks[6], (vocab_size, hidden_size), jnp.float32),
        "vocab_bias": 0.1 * jax.random.normal(ks[7], (vocab_size,), jnp.float32),
    }


def _reference(hidden_states, params):
    """Pure-JAX f32 reference mirroring the PyTorch forward (unfused)."""
    h = hidden_states @ params["transform_w"].T + params["transform_b"]
    h = _gelu_exact(h)
    mean = jnp.mean(h, -1, keepdims=True)
    var = jnp.mean(jnp.square(h - mean), -1, keepdims=True)
    h = (h - mean) / jnp.sqrt(var + LN_EPS) * params["ln_gamma"] + params["ln_beta"]
    h = h @ params["decoder1_w"].T
    h = h @ params["decoder2_w"].T
    return h @ params["decoder_w"].T + params["vocab_bias"]


if __name__ == "__main__":
    # Small BERT-like config; V deliberately NOT a multiple of 128 so the
    # lane-dense vocab-padding path is exercised.
    B, S, H, V = 2, 8, 32, 250
    key = jax.random.PRNGKey(0)
    k_x, k_p = jax.random.split(key)

    hidden_states = jax.random.normal(k_x, (B, S, H), jnp.float32)
    params = init_params(k_p, H, V)
    prepared = prepare_params(params)   # one-time repack (not per forward call)

    logits = bert_lm_prediction_multi_head(hidden_states, prepared)
    logits = jax.block_until_ready(logits)

    ref = _reference(hidden_states, params)
    assert logits.shape == (B, S, V)
    # bf16 MXU operands (f32 accumulation) + fused decoder chain => loosened
    # tolerance vs the f32 unfused reference.
    scale = float(jnp.max(jnp.abs(ref)))
    max_err = float(jnp.max(jnp.abs(logits - ref)))
    assert max_err <= 5e-2 * scale + 1e-2, (max_err, scale)

    print("KERNEL_OK")
</pallas_src>

<mosaic_0001>
module attributes {stable_mosaic.version = 11 : i64} {
  func.func @_head_kernel(%arg0: i32, %arg1: i32, %arg2: memref<16x32xbf16, #tpu.memory_space<vmem>>, %arg3: memref<32x32xbf16, #tpu.memory_space<vmem>>, %arg4: memref<1x32xf32, #tpu.memory_space<vmem>>, %arg5: memref<1x32xf32, #tpu.memory_space<vmem>>, %arg6: memref<1x32xf32, #tpu.memory_space<vmem>>, %arg7: memref<1x32x256xbf16, #tpu.memory_space<vmem>>, %arg8: memref<1x256xf32, #tpu.memory_space<vmem>>, %arg9: memref<16x256xf32, #tpu.memory_space<vmem>>, %arg10: memref<16x32xbf16, #tpu.memory_space<vmem>>) attributes {dimension_semantics = [#tpu.dimension_semantics<parallel>, #tpu.dimension_semantics<arbitrary>], iteration_bounds = array<i64: 1, 1>, scalar_prefetch = 0 : i64, scratch_operands = 1 : i64, tpu.core_type = #tpu.core_type<tc>, window_params = [{transform_indices = @transform_0, window_bounds = array<i64: 16, 32>}, {pipeline_mode = #tpu.pipeline_mode<synchronous>, transform_indices = @transform_1, window_bounds = array<i64: 32, 32>}, {pipeline_mode = #tpu.pipeline_mode<synchronous>, transform_indices = @transform_2, window_bounds = array<i64: 1, 32>}, {pipeline_mode = #tpu.pipeline_mode<synchronous>, transform_indices = @transform_3, window_bounds = array<i64: 1, 32>}, {pipeline_mode = #tpu.pipeline_mode<synchronous>, transform_indices = @transform_4, window_bounds = array<i64: 1, 32>}, {pipeline_mode = #tpu.pipeline_mode<double_buffered>, transform_indices = @transform_5, window_bounds = array<i64: 1, 32, 256>}, {transform_indices = @transform_6, window_bounds = array<i64: 1, 256>}, {transform_indices = @transform_7, window_bounds = array<i64: 16, 256>}]} {
    %c0_i32 = arith.constant 0 : i32
    %0 = arith.cmpi eq, %arg1, %c0_i32 : i32
    %1 = arith.extui %0 : i1 to i32
    %c0_i32_0 = arith.constant 0 : i32
    %2 = arith.cmpi ne, %1, %c0_i32_0 : i32
    scf.if %2 {
      %c0_9 = arith.constant 0 : index
      %c0_10 = arith.constant 0 : index
      %11 = vector.load %arg2[%c0_9, %c0_10] : memref<16x32xbf16, #tpu.memory_space<vmem>>, vector<16x32xbf16>
      %c0_11 = arith.constant 0 : index
      %c0_12 = arith.constant 0 : index
      %12 = vector.load %arg3[%c0_11, %c0_12] : memref<32x32xbf16, #tpu.memory_space<vmem>>, vector<32x32xbf16>
      %cst_13 = arith.constant dense<0.000000e+00> : vector<16x32xf32>
      %13 = tpu.matmul %11, %12, %cst_13 {dimension_numbers = #tpu.dot_dimension_numbers<[1], [0], [0], [1], [0, 0, 1, 1], [], []>} : vector<16x32xbf16>, vector<32x32xbf16>, vector<16x32xf32> -> vector<16x32xf32>
      %c0_14 = arith.constant 0 : index
      %c0_15 = arith.constant 0 : index
      %14 = vector.load %arg4[%c0_14, %c0_15] : memref<1x32xf32, #tpu.memory_space<vmem>>, vector<1x32xf32>
      %15 = vector.broadcast %14 : vector<1x32xf32> to vector<16x32xf32>
      %16 = arith.addf %13, %15 : vector<16x32xf32>
      %cst_16 = arith.constant 5.000000e-01 : f32
      %17 = vector.broadcast %cst_16 : f32 to vector<16x32xf32>
      %18 = arith.mulf %17, %16 : vector<16x32xf32>
      %cst_17 = arith.constant 1.41421354 : f32
      %19 = vector.broadcast %cst_17 : f32 to vector<16x32xf32>
      %20 = arith.divf %16, %19 : vector<16x32xf32>
      %21 = math.erf %20 : vector<16x32xf32>
      %cst_18 = arith.constant 1.000000e+00 : f32
      %22 = vector.broadcast %cst_18 : f32 to vector<16x32xf32>
      %23 = arith.addf %22, %21 : vector<16x32xf32>
      %24 = arith.mulf %18, %23 : vector<16x32xf32>
      %cst_19 = arith.constant dense<0.000000e+00> : vector<16xf32>
      %25 = vector.multi_reduction <add>, %24, %cst_19 [1] : vector<16x32xf32> to vector<16xf32>
      %26 = vector.shape_cast %25 : vector<16xf32> to vector<16x1xf32>
      %cst_20 = arith.constant 3.200000e+01 : f32
      %27 = vector.broadcast %cst_20 : f32 to vector<16x1xf32>
      %28 = arith.divf %26, %27 : vector<16x1xf32>
      %29 = vector.broadcast %28 : vector<16x1xf32> to vector<16x32xf32>
      %30 = arith.subf %24, %29 : vector<16x32xf32>
      %31 = arith.mulf %30, %30 : vector<16x32xf32>
      %cst_21 = arith.constant dense<0.000000e+00> : vector<16xf32>
      %32 = vector.multi_reduction <add>, %31, %cst_21 [1] : vector<16x32xf32> to vector<16xf32>
      %33 = vector.shape_cast %32 : vector<16xf32> to vector<16x1xf32>
      %cst_22 = arith.constant 3.200000e+01 : f32
      %34 = vector.broadcast %cst_22 : f32 to vector<16x1xf32>
      %35 = arith.divf %33, %34 : vector<16x1xf32>
      %36 = vector.broadcast %28 : vector<16x1xf32> to vector<16x32xf32>
      %37 = arith.subf %24, %36 : vector<16x32xf32>
      %cst_23 = arith.constant 9.99999996E-13 : f32
      %38 = vector.broadcast %cst_23 : f32 to vector<16x1xf32>
      %39 = arith.addf %35, %38 : vector<16x1xf32>
      %40 = math.rsqrt %39 : vector<16x1xf32>
      %41 = vector.broadcast %40 : vector<16x1xf32> to vector<16x32xf32>
      %42 = arith.mulf %37, %41 : vector<16x32xf32>
      %c0_24 = arith.constant 0 : index
      %c0_25 = arith.constant 0 : index
      %43 = vector.load %arg5[%c0_24, %c0_25] : memref<1x32xf32, #tpu.memory_space<vmem>>, vector<1x32xf32>
      %44 = vector.broadcast %43 : vector<1x32xf32> to vector<16x32xf32>
      %45 = arith.mulf %42, %44 : vector<16x32xf32>
      %c0_26 = arith.constant 0 : index
      %c0_27 = arith.constant 0 : index
      %46 = vector.load %arg6[%c0_26, %c0_27] : memref<1x32xf32, #tpu.memory_space<vmem>>, vector<1x32xf32>
      %47 = vector.broadcast %46 : vector<1x32xf32> to vector<16x32xf32>
      %48 = arith.addf %45, %47 : vector<16x32xf32>
      %49 = arith.truncf %48 : vector<16x32xf32> to vector<16x32xbf16>
      %c0_28 = arith.constant 0 : index
      %c0_29 = arith.constant 0 : index
      %50 = vector.load %arg10[%c0_28, %c0_29] : memref<16x32xbf16, #tpu.memory_space<vmem>>, vector<16x32xbf16>
      tpu.vector_store %arg10[%c0_28, %c0_29], %49 {strides = array<i32>} : memref<16x32xbf16, #tpu.memory_space<vmem>>, vector<16x32xbf16>,
    } else {
    }
    %c0 = arith.constant 0 : index
    %c0_1 = arith.constant 0 : index
    %3 = vector.load %arg10[%c0, %c0_1] : memref<16x32xbf16, #tpu.memory_space<vmem>>, vector<16x32xbf16>
    %c0_2 = arith.constant 0 : index
    %c0_3 = arith.constant 0 : index
    %c0_4 = arith.constant 0 : index
    %4 = vector.load %arg7[%c0_2, %c0_3, %c0_4] : memref<1x32x256xbf16, #tpu.memory_space<vmem>>, vector<1x32x256xbf16>
    %5 = vector.shape_cast %4 : vector<1x32x256xbf16> to vector<32x256xbf16>
    %cst = arith.constant dense<0.000000e+00> : vector<16x256xf32>
    %6 = tpu.matmul %3, %5, %cst {dimension_numbers = #tpu.dot_dimension_numbers<[1], [0], [0], [1], [0, 0, 1, 1], [], []>} : vector<16x32xbf16>, vector<32x256xbf16>, vector<16x256xf32> -> vector<16x256xf32>
    %c0_5 = arith.constant 0 : index
    %c0_6 = arith.constant 0 : index
    %7 = vector.load %arg8[%c0_5, %c0_6] : memref<1x256xf32, #tpu.memory_space<vmem>>, vector<1x256xf32>
    %8 = vector.broadcast %7 : vector<1x256xf32> to vector<16x256xf32>
    %9 = arith.addf %6, %8 : vector<16x256xf32>
    %c0_7 = arith.constant 0 : index
    %c0_8 = arith.constant 0 : index
    %10 = vector.load %arg9[%c0_7, %c0_8] : memref<16x256xf32, #tpu.memory_space<vmem>>, vector<16x256xf32>
    tpu.vector_store %arg9[%c0_7, %c0_8], %9 {strides = array<i32>} : memref<16x256xf32, #tpu.memory_space<vmem>>, vector<16x256xf32>,
    return
  }
  func.func @transform_0(%arg0: i32, %arg1: i32) -> (i32, i32) {
    %c0_i32 = arith.constant 0 : i32
    %c0_i32_0 = arith.constant 0 : i32
    return %arg0, %c0_i32 : i32, i32
  }
  func.func @transform_1(%arg0: i32, %arg1: i32) -> (i32, i32) {
    %c0_i32 = arith.constant 0 : i32
    %c0_i32_0 = arith.constant 0 : i32
    %c0_i32_1 = arith.constant 0 : i32
    return %c0_i32, %c0_i32_0 : i32, i32
  }
  func.func @transform_2(%arg0: i32, %arg1: i32) -> (i32, i32) {
    %c0_i32 = arith.constant 0 : i32
    %c0_i32_0 = arith.constant 0 : i32
    %c0_i32_1 = arith.constant 0 : i32
    return %c0_i32, %c0_i32_0 : i32, i32
  }
  func.func @transform_3(%arg0: i32, %arg1: i32) -> (i32, i32) {
    %c0_i32 = arith.constant 0 : i32
    %c0_i32_0 = arith.constant 0 : i32
    %c0_i32_1 = arith.constant 0 : i32
    return %c0_i32, %c0_i32_0 : i32, i32
  }
  func.func @transform_4(%arg0: i32, %arg1: i32) -> (i32, i32) {
    %c0_i32 = arith.constant 0 : i32
    %c0_i32_0 = arith.constant 0 : i32
    %c0_i32_1 = arith.constant 0 : i32
    return %c0_i32, %c0_i32_0 : i32, i32
  }
  func.func @transform_5(%arg0: i32, %arg1: i32) -> (i32, i32, i32) {
    %c0_i32 = arith.constant 0 : i32
    %c0_i32_0 = arith.constant 0 : i32
    %c0_i32_1 = arith.constant 0 : i32
    return %arg1, %c0_i32, %c0_i32_0 : i32, i32, i32
  }
  func.func @transform_6(%arg0: i32, %arg1: i32) -> (i32, i32) {
    %c0_i32 = arith.constant 0 : i32
    %c0_i32_0 = arith.constant 0 : i32
    return %c0_i32, %arg1 : i32, i32
  }
  func.func @transform_7(%arg0: i32, %arg1: i32) -> (i32, i32) {
    %c0_i32 = arith.constant 0 : i32
    return %arg0, %arg1 : i32, i32
  }
}

</mosaic_0001>

<bundles_post_ra>
// kernel: tpu_custom_call.1
= control target key start
LH: loop header
LB: loop body
LE: loop exit
PB: predicated region body
PF: predicated region fallthrough
CT: control target
= control target key end

     0   :  { %12 = vsyncpa [#allocation4], 0  ;;  %s586_s0 = inlined_call_operand.hbm [shape: bf16[16,32], index: 0, kind: input, shape index: {}]   ;;  %s587_s1 = inlined_call_operand.hbm [shape: bf16[32,32], index: 1, kind: input, shape index: {}]   ;;  %s588_s2 = inlined_call_operand.vmem [shape: f32[1,32], index: 2, kind: input, shape index: {}]   ;;  %s589_s3 = inlined_call_operand.vmem [shape: f32[1,32], index: 3, kind: input, shape index: {}]   ;;  %s590_s4 = inlined_call_operand.vmem [shape: f32[1,32], index: 4, kind: input, shape index: {}]   ;;  %s591_s5 = inlined_call_operand.hbm [shape: bf16[1,32,256], index: 5, kind: input, shape index: {}]   ;;  %s592_s6 = inlined_call_operand.vmem [shape: f32[1,256], index: 6, kind: input, shape index: {}]   ;;  %s593_s7 = inlined_call_operand.hbm [shape: f32[16,256], index: 7, kind: output, shape index: {}]  }
   0x1   :  { %13 = vsyncpa [#allocation7], 0 }
   0x2   :  { %14 = vsyncpa [#allocation5], 0  ;;  %s459_s24 = smov [#allocation6]   ;;  %s460_s26 = smov [#allocation3]  }
   0x3   :  { %s32_s25 = sshll.u32 %s459_s24, 4  ;;  %s20_s27 = sshll.u32 %s460_s26, 4  ;;  %s33_s25 = int_to_ptr.vmem [resolvable:$true] %s32_s25  ;;  %s512_s27 = int_to_ptr.vmem [resolvable:$true] %s20_s27 }
   0x4   :  { %s365_s30 = scalar_lea.hbm %s587_s1, 256 }
   0x5   :  { %p366_p0 = scmp.ne.s32.totalorder %s587_s1, %s365_s30  ;;  %p369_p1 = scmp.lt.u32.totalorder %s365_s30, %s587_s1 }
   0x7   :  { %p371_p2 = pnand %p369_p1, %p366_p0 }
   0x9   :  { %374 = shalt.err (!%p371_p2)
}
   0xa   :  { %s375_s12 = scalar_lea.vmem %s33_s25, 256  ;;  %p380_p4 = scmp.lt.s32.totalorder %s33_s25, %s33_s25 }
   0xb   :  { %p376_p3 = scmp.ne.s32.totalorder %s33_s25, %s375_s12  ;;  %p381_p5 = scmp.lt.s32.totalorder %s375_s12, %s375_s12 }
   0xd   :  { %p382_p6 = por %p381_p5, %p380_p4 }
   0xf   :  { %p383_p7 = pnand %p382_p6, %p376_p3 }
  0x11   :  { %386 = shalt.err (!%p383_p7)
}
  0x12   :  { %s461_s13 = smov 64   ;;  %s462_s14 = smov 4  }
  0x13   :  { %38 = dma.hbm_to_vmem [thread:$0]  %s587_s1, 256, %s33_s25, [#allocation7], %s461_s13, %s461_s13, %s462_s14  }
  0x14   :  { %s387_s19 = scalar_lea.hbm %s586_s0, 128 }
  0x15   :  { %p388_p8 = scmp.ne.s32.totalorder %s586_s0, %s387_s19  ;;  %p391_p9 = scmp.lt.u32.totalorder %s387_s19, %s586_s0 }
  0x17   :  { %p393_p10 = pnand %p391_p9, %p388_p8 }
  0x19   :  { %396 = shalt.err (!%p393_p10)
}
  0x1a   :  { %s397_s24 = scalar_lea.vmem %s512_s27, 128  ;;  %p402_p12 = scmp.lt.s32.totalorder %s512_s27, %s512_s27 }
  0x1b   :  { %p398_p11 = scmp.ne.s32.totalorder %s512_s27, %s397_s24  ;;  %p403_p13 = scmp.lt.s32.totalorder %s397_s24, %s397_s24 }
  0x1d   :  { %p404_p0 = por %p403_p13, %p402_p12 }
  0x1f   :  { %p405_p1 = pnand %p404_p0, %p398_p11 }
  0x21   :  { %408 = shalt.err (!%p405_p1)
}
  0x22   :  { %26 = dma.hbm_to_vmem [thread:$0]  %s586_s0, 128, %s512_s27, [#allocation4], %s461_s13, %s461_s13, %s462_s14  }
  0x23   :  { %s463_s26 = smov [#allocation8]   ;;  %s409_s8 = scalar_lea.hbm %s591_s5, 512 }
  0x24   :  { %s50_s28 = sshll.u32 %s463_s26, 4  ;;  %p410_p2 = scmp.ne.s32.totalorder %s591_s5, %s409_s8  ;;  %s51_s28 = int_to_ptr.vmem [resolvable:$true] %s50_s28 }
  0x25   :  { %p413_p3 = scmp.lt.u32.totalorder %s409_s8, %s591_s5 }
  0x27   :  { %p415_p4 = pnand %p413_p3, %p410_p2 }
  0x29   :  { %418 = shalt.err (!%p415_p4)
}
  0x2a   :  { %s419_s15 = scalar_lea.vmem %s51_s28, 512  ;;  %p424_p6 = scmp.lt.s32.totalorder %s51_s28, %s51_s28 }
  0x2b   :  { %p420_p5 = scmp.ne.s32.totalorder %s51_s28, %s419_s15  ;;  %p425_p7 = scmp.lt.s32.totalorder %s419_s15, %s419_s15 }
  0x2d   :  { %p426_p8 = por %p425_p7, %p424_p6 }
  0x2f   :  { %p427_p9 = pnand %p426_p8, %p420_p5 }
  0x31   :  { %430 = shalt.err (!%p427_p9)
}
  0x32   :  { %s464_s0 = smov 128   ;;  %s465_s27 = smov 8  }
  0x33   :  { %56 = dma.hbm_to_vmem [thread:$0]  %s591_s5, 512, %s51_s28, [#allocation7], %s464_s0, %s464_s0, %s465_s27  }
  0x34   :  { %453 = dma.done.wait [#allocation4], 128  }
  0x35   :  { %454 = vsyncadd [#allocation4], 4294967168 }
  0x36   :  { %455 = dma.done.wait [#allocation7], 768  }
  0x37   :  { %456 = vsyncadd [#allocation7], 4294966528  ;;  %v466_v0 = vmov 0.0   ;;  %vm467_vm0 = vmmov 0   ;;  %v348_v1 = vld [vmem:[#allocation6] sm:$0xff]   ;;  %v349_v2 = vld [vmem:[#allocation6 + $0x8] sm:$0xff]   ;;  %v213_v56 = vlaneseq }
  0x38   :  { %327 = vmatprep.subr.bf16.mxu0 %v466_v0  ;;  %331 = vmatprep.mubr.msk.bf16.mxu0 %vm467_vm0, %v466_v0  ;;  %v350_v3 = vld [vmem:[#allocation3] sm:$0xff]   ;;  %vm103_vm1 = vcmask 261120   ;;  %v312_v4 = vld [vmem:[%s588_s2] ss:$0 sm:$0xff]  ;;  %v354_v35 = vld [vmem:[#allocation8 + $0x14] ss:$8 sps:$4 sm:$0xff]  }
  0x39   :  { %328 = vmatpush3.bf16.msra.mxu0 %v348_v1  ;;  %v351_v33 = vld [vmem:[#allocation8 + $0x4] ss:$8 sps:$4 sm:$0xff]   ;;  %v353_v34 = vld [vmem:[#allocation8] ss:$8 sps:$4 sm:$0xff]   ;;  %v356_v36 = vld [vmem:[#allocation8 + $0x10] ss:$8 sps:$4 sm:$0xff]  }
  0x3a   :  { %329 = vmatprep.subr.bf16.mxu0 %v466_v0  ;;  %247 = vmatprep.subr.bf16.mxu1 %v351_v33  ;;  %v468_v37 = vmov 0   ;;  %v317_v46 = vld [vmem:[%s589_s3] ss:$0 sm:$0xff]  ;;  %v214_v57 = vshrl.u32 %v213_v56, 7 }
  0x3b   :  { %248 = vmatpush1.bf16.msra.mxu1 %v353_v34  ;;  %279 = vmatprep.mubr.bf16.mxu1 %v468_v37  ;;  %v318_v50 = vld [vmem:[%s590_s4] ss:$0 sm:$0xff]  ;;  %s469_s4 = smov [#allocation9]  }
  0x3c   :  { %249 = vmatprep.subr.bf16.mxu1 %v354_v35  ;;  %v215_v58 = vsub.s32 0, %v214_v57  ;;  %v211_v59 = vld [vmem:[%s592_s6] sm:$0x3]  ;;  %v219_v60 = vsub.s32 1, %v214_v57  ;;  %s299_s21 = sshll.u32 %s469_s4, 4  ;;  %s300_s21 = int_to_ptr.vmem [resolvable:$true] %s299_s21 }
  0x3d   :  { %330 = vmatpush3.bf16.msra.mxu0 %v349_v2  ;;  %s431_s22 = scalar_lea.vmem %s300_s21, 512  ;;  %p436_p11 = scmp.lt.s32.totalorder %s300_s21, %s300_s21 }
  0x3e   :  { %v216_v61 = vrot.slane %v211_v59, %v215_v58  ;;  %v220_v62 = vrot.slane %v211_v59, %v219_v60  ;;  %p432_p10 = scmp.ne.s32.totalorder %s300_s21, %s431_s22  ;;  %p437_p12 = scmp.lt.s32.totalorder %s431_s22, %s431_s22 }
  0x3f   :  { %250 = vmatpush1.bf16.msra.mxu1 %v356_v36 }
  0x40   :  { %332 = vmatmul.mubr.msk.bf16.vlgmr.msra.gmra.mrb[0].mxu0 %vm103_vm1, %v350_v3  ;;  %p438_p13 = por %p437_p12, %p436_p11 }
  0x42   :  { %p439_p0 = pnand %p438_p13, %p432_p10 }
 0x113   :  { %v141_v5 = vpop.f32.mrb[0].mxu0 }
 0x114   :  { %v142_v6 = vadd.f32 %v312_v4, %v141_v5  ;;  %v333_v7 = vpop.f32.mrb[1].mxu0 }
 0x115   :  { %v144_v8 = vpop.f32.mrb[2].mxu0 }
 0x116   :  { %v151_v9 = vmul.f32 0.70710677, %v142_v6  ;;  %v145_v10 = vadd.f32 %v312_v4, %v144_v8  ;;  %v334_v11 = vpop.f32.mrb[3].mxu0  ;;  %v148_v14 = vmul.f32 0.5, %v142_v6 }
 0x118   :  { %357 = verf.f32 %v151_v9  ;;  %v152_v12 = vmul.f32 0.70710677, %v145_v10  ;;  %v149_v17 = vmul.f32 0.5, %v145_v10 }
 0x11a   :  { %359 = verf.f32 %v152_v12 }
 0x122   :  { %v358_v13 = vpop.eup %357 }
 0x123   :  { %v155_v15 = vadd.f32 1.0, %v358_v13 }
 0x124   :  { %v360_v16 = vpop.eup %359 }
 0x125   :  { %v157_v18 = vmul.f32 %v155_v15, %v148_v14  ;;  %v156_v19 = vadd.f32 1.0, %v360_v16 }
 0x127   :  { %v159_v20 = vsel %vm103_vm1, %v157_v18, 0.0  ;;  %v158_v21 = vmul.f32 %v156_v19, %v149_v17 }
 0x128   :  { %160 = vadd.xlane.f32.xlu0 %v159_v20 }
 0x129   :  { %v162_v22 = vsel %vm103_vm1, %v158_v21, 0.0 }
 0x12c   :  { %163 = vadd.xlane.f32.xlu0 %v162_v22 }
 0x1b5   :  { %v161_v23 = vpop.xlane.xlu0 %160 }
 0x1b6   :  { %v166_v24 = vmul.f32 0.03125, %v161_v23 }
 0x1b8   :  { %v168_v25 = vsub.f32 %v157_v18, %v166_v24 }
 0x1b9   :  { %v164_v26 = vpop.xlane.xlu0 %163 }
 0x1ba   :  { %v167_v27 = vmul.f32 0.03125, %v164_v26  ;;  %v170_v28 = vmul.f32 %v168_v25, %v168_v25 }
 0x1bc   :  { %v169_v29 = vsub.f32 %v158_v21, %v167_v27  ;;  %v172_v30 = vsel %vm103_vm1, %v170_v28, 0.0 }
 0x1bd   :  { %173 = vadd.xlane.f32.xlu1 %v172_v30 }
 0x1be   :  { %v171_v31 = vmul.f32 %v169_v29, %v169_v29 }
 0x1c0   :  { %v175_v32 = vsel %vm103_vm1, %v171_v31, 0.0 }
 0x1c1   :  { %176 = vadd.xlane.f32.xlu1 %v175_v32 }
 0x24a   :  { %v174_v38 = vpop.xlane.xlu1 %173 }
 0x24b   :  { %v178_v39 = vmul.f32 0.03125, %v174_v38 }
 0x24d   :  { %v180_v40 = vadd.f32 1e-12, %v178_v39 }
 0x24e   :  { %v177_v41 = vpop.xlane.xlu1 %176 }
 0x24f   :  { %361 = vrsqrt.f32 %v180_v40  ;;  %v179_v42 = vmul.f32 0.03125, %v177_v41 }
 0x251   :  { %v181_v43 = vadd.f32 1e-12, %v179_v42 }
 0x253   :  { %363 = vrsqrt.f32 %v181_v43 }
 0x259   :  { %v362_v44 = vpop.eup %361 }
 0x25a   :  { %v184_v45 = vmul.f32 %v362_v44, %v168_v25 }
 0x25c   :  { %v193_v48 = vmul.f32 %v317_v46, %v184_v45 }
 0x25d   :  { %v364_v47 = vpop.eup %363 }
 0x25e   :  { %v185_v49 = vmul.f32 %v364_v47, %v169_v29  ;;  %v202_v52 = vadd.f32 %v318_v50, %v193_v48 }
 0x260   :  { %v194_v51 = vmul.f32 %v317_v46, %v185_v49 }
 0x262   :  { %v203_v53 = vadd.f32 %v318_v50, %v194_v51 }
 0x264   :  { %v204_v54 = vpack.c.bf16 %v203_v53, %v202_v52 }
 0x266   :  { %205 = vst.msk [vmem:[#allocation2] sm:$0xff] %vm103_vm1, %v204_v54 }
 0x26d   :  { %v206_v55 = vld [vmem:[#allocation2] sm:$0xff] }
 0x26e   :  { %323 = vmatmul.mubr.msk.bf16.vlgmr.msra.gmra.mrb[0].mxu1 %vm103_vm1, %v206_v55 }
 0x341   :  { %v281_v63 = vpop.f32.mrb[0].mxu1 }
 0x342   :  { %v282_v0 = vadd.f32 %v281_v63, %v216_v61  ;;  %v283_v1 = vpop.f32.mrb[1].mxu1 }
 0x343   :  { %v284_v2 = vadd.f32 %v283_v1, %v220_v62  ;;  %v285_v3 = vpop.f32.mrb[2].mxu1 }
 0x344   :  { %290 = vst [vmem:[#allocation9] sm:$0xff] %v282_v0  ;;  %v286_v4 = vadd.f32 %v285_v3, %v216_v61  ;;  %v287_v5 = vpop.f32.mrb[3].mxu1 }
 0x345   :  { %291 = vst [vmem:[#allocation9 + $0x8] sm:$0xff] %v284_v2  ;;  %v288_v6 = vadd.f32 %v287_v5, %v220_v62 }
 0x346   :  { %292 = vst [vmem:[#allocation9 + $0x10] sm:$0xff] %v286_v4 }
 0x347   :  { %293 = vst [vmem:[#allocation9 + $0x18] sm:$0xff] %v288_v6 }
 0x348   :  { %442 = shalt.err (!%p439_p0)
}
 0x349   :  { %s443_s24 = scalar_lea.hbm %s593_s7, 512 }
 0x34a   :  { %p444_p1 = scmp.ne.s32.totalorder %s593_s7, %s443_s24  ;;  %p447_p2 = scmp.lt.u32.totalorder %s443_s24, %s593_s7 }
 0x34c   :  { %p449_p3 = pnand %p447_p2, %p444_p1 }
 0x34e   :  { %452 = shalt.err (!%p449_p3)
}
 0x34f   :  { %s470_s29 = smov 256   ;;  %s471_s30 = smov 16  }
 0x350   :  { %305 = dma.vmem_to_hbm [thread:$0]  %s300_s21, 512, %s593_s7, [#allocation5], %s470_s29, %s470_s29, %s471_s30  }
 0x351   :  { %457 = dma.done.wait [#allocation5], 512  }
 0x352   :  { %458 = vsyncadd [#allocation5], 4294966784 }
 0x353   :  { %309 = vsyncpa [#allocation4], 1 }
 0x354   :  { %310 = vsyncpa [#allocation7], 1 }
 0x355   :  { %311 = vsyncpa [#allocation5], 1 }

</bundles_post_ra>
